<compile_context>
chip_gen: v7x
topology: tpu7x:2x2x1
jax: 0.10.0
libtpu: 0.0.40
codegen_flags: <defaults>
</compile_context>

<pallas_src>
import functools

import jax
import jax.numpy as jnp
from jax.experimental import pallas as pl
from jax.experimental.pallas import tpu as pltpu


_ACTIV = {
    "relu": lambda y: jnp.maximum(y, 0.0),
    "gelu": lambda y: jax.nn.gelu(y, approximate=False),
    "swish": jax.nn.silu,
    "leaky_relu": lambda y: jnp.where(y >= 0, y, 0.01 * y),
}


# ---------------------------------------------------------------------------
# Wrapper-side glue (pure indexing, input-sized; no hot compute).
# ---------------------------------------------------------------------------
def _im2col_pool_ordered(x, kh, kw, stride, padding, pool_k, pool_s):
    """Transposed im2col with pool-window-major column order.

    Returns (K, nwin*Mp) where K is ordered (cin, kh, kw) and the columns are
    ordered (di, dj, n, ph, pw): column t*Mp + q holds the conv patch for
    output position (n, ph*pool_s + di, pw*pool_s + dj), t = di*pool_k + dj,
    q = flat (n, ph, pw).  Pooling in-kernel is then a reduce over the t axis
    realised as vreg-aligned static lane slices.
    """
    n, cin, h, w = x.shape
    xp = jnp.pad(x, ((0, 0), (0, 0), (padding, padding), (padding, padding)))
    ho = (h + 2 * padding - kh) // stride + 1
    wo = (w + 2 * padding - kw) // stride + 1
    cols = []
    for i in range(kh):
        for j in range(kw):
            cols.append(xp[:, :, i:i + stride * ho:stride, j:j + stride * wo:stride])
    pat = jnp.stack(cols, axis=2)                     # (N, Cin, KH*KW, Ho, Wo)
    pat = pat.transpose(1, 2, 0, 3, 4)                # (Cin, KH*KW, N, Ho, Wo)

    hp = (ho - pool_k) // pool_s + 1
    wp = (wo - pool_k) // pool_s + 1
    blocks = []
    for di in range(pool_k):
        for dj in range(pool_k):
            sub = pat[:, :, :,
                      di:di + pool_s * hp:pool_s,
                      dj:dj + pool_s * wp:pool_s]     # (Cin, KH*KW, N, Hp, Wp)
            blocks.append(sub.reshape(cin * kh * kw, n * hp * wp))
    patches = jnp.concatenate(blocks, axis=1)         # (K, nwin*Mp)
    return patches, ho, wo, hp, wp


# ---------------------------------------------------------------------------
# Fused kernel: conv GEMM + BatchNorm (batch stats) + activation + pooling.
# ---------------------------------------------------------------------------
def _make_kernel(activ_fn, pool_type, eps, inv_window, nwin, mp):
    def kernel(p_ref, w_ref, g_ref, b_ref, o_ref):
        # Lane-dense conv GEMM: (Cout, Kp) @ (Kp, M) -> (Cout, M), f32 acc.
        conv = jnp.dot(w_ref[...], p_ref[...], preferred_element_type=jnp.float32)

        # BatchNorm2d training-mode (biased) batch stats: lane reduction.
        # (Column permutation does not change per-channel mean/var.)
        mean = jnp.mean(conv, axis=-1, keepdims=True)             # (Cout, 1)
        cen = conv - mean
        var = jnp.mean(cen * cen, axis=-1, keepdims=True)         # (Cout, 1)
        y = cen * jax.lax.rsqrt(var + eps)
        y = y * g_ref[...] + b_ref[...]                           # gamma/beta (Cout,1)
        y = activ_fn(y)

        # Fused pooling: the pool-window offsets are contiguous lane blocks of
        # width Mp (a multiple of 128), so each slice is plain vreg selection;
        # the reduce is a handful of elementwise VPU ops.
        parts = [y[:, t * mp:(t + 1) * mp] for t in range(nwin)]
        if pool_type == "max":
            red = functools.reduce(jnp.maximum, parts)
        else:  # 'avg'
            red = functools.reduce(jnp.add, parts) * inv_window
        o_ref[...] = red                                          # (Cout, Mp), lane-dense
    return kernel


# ---------------------------------------------------------------------------
# ConvUnit forward.
# ---------------------------------------------------------------------------
def conv_unit_forward(x, w, b, gamma, beta, *, stride=1, padding=1,
                      pool_type="max", pool_k=2, pool_s=2,
                      activ_type="relu", eps=1e-5):
    n, cin, _, _ = x.shape
    cout, cin_w, kh, kw = w.shape
    assert cin == cin_w
    # TODO(synk): overlapping / partially-covering pool windows need the
    # duplicated/leftover conv columns appended for exact BN batch stats.
    assert pool_k == pool_s, "fused path assumes non-overlapping pooling"

    # Conv bias is intentionally unused: a per-channel constant added before
    # training-mode BatchNorm is exactly cancelled by the mean subtraction.
    del b

    patches, ho, wo, hp, wp = _im2col_pool_ordered(
        x, kh, kw, stride, padding, pool_k, pool_s)               # (K, M) f32
    assert ho % pool_k == 0 and wo % pool_k == 0, "pool must tile conv output"

    k = cin * kh * kw
    kp = -(-k // 16) * 16                                         # bf16 sublane-align
    patches = jnp.pad(patches, ((0, kp - k), (0, 0))).astype(jnp.bfloat16)
    wmat = jnp.pad(w.reshape(cout, k), ((0, 0), (0, kp - k))).astype(jnp.bfloat16)

    mp = n * hp * wp
    nwin = pool_k * pool_k
    kernel = _make_kernel(_ACTIV[activ_type], pool_type, float(eps),
                          1.0 / float(nwin), nwin, mp)

    vspec = pl.BlockSpec(memory_space=pltpu.MemorySpace.VMEM)
    pooled = pl.pallas_call(
        kernel,
        out_shape=jax.ShapeDtypeStruct((cout, mp), jnp.float32),
        in_specs=[vspec] * 4,
        out_specs=vspec,
    )(patches, wmat,
      gamma.reshape(cout, 1).astype(jnp.float32),
      beta.reshape(cout, 1).astype(jnp.float32))

    # (Cout, N*Hp*Wp) -> NCHW
    return pooled.reshape(cout, n, hp, wp).transpose(1, 0, 2, 3)


# ---------------------------------------------------------------------------
# Pure-JAX reference (for a sanity check).
# ---------------------------------------------------------------------------
def _reference(x, w, b, gamma, beta, eps=1e-5):
    conv = jax.lax.conv_general_dilated(
        x, w, window_strides=(1, 1), padding=((1, 1), (1, 1)),
        dimension_numbers=("NCHW", "OIHW", "NCHW"),
        precision=jax.lax.Precision.HIGHEST,
    ) + b.reshape(1, -1, 1, 1)
    mean = conv.mean(axis=(0, 2, 3), keepdims=True)
    var = jnp.square(conv - mean).mean(axis=(0, 2, 3), keepdims=True)
    y = gamma.reshape(1, -1, 1, 1) * (conv - mean) * jax.lax.rsqrt(var + eps)
    y = y + beta.reshape(1, -1, 1, 1)
    y = jnp.maximum(y, 0.0)
    return jax.lax.reduce_window(y, -jnp.inf, jax.lax.max,
                                 (1, 1, 2, 2), (1, 1, 2, 2), "VALID")


if __name__ == "__main__":
    key = jax.random.PRNGKey(0)
    k_x, k_w, k_b, k_g, k_bt = jax.random.split(key, 5)

    N, CIN, H, W = 2, 4, 16, 16
    COUT, KS = 8, 3

    x = jax.random.normal(k_x, (N, CIN, H, W), jnp.float32)
    w = jax.random.normal(k_w, (COUT, CIN, KS, KS), jnp.float32) * 0.1
    b = jax.random.normal(k_b, (COUT,), jnp.float32) * 0.1
    gamma = 1.0 + 0.1 * jax.random.normal(k_g, (COUT,), jnp.float32)
    beta = 0.1 * jax.random.normal(k_bt, (COUT,), jnp.float32)

    out = conv_unit_forward(
        x, w, b, gamma, beta,
        stride=1, padding=1,
        pool_type="max", pool_k=2, pool_s=2,
        activ_type="relu",
    )
    out = jax.block_until_ready(out)

    ref = _reference(x, w, b, gamma, beta)
    assert out.shape == ref.shape == (N, COUT, H // 2, W // 2), out.shape
    assert jnp.allclose(out, ref, rtol=1e-2, atol=1e-2), (
        float(jnp.max(jnp.abs(out - ref)))
    )

    print("KERNEL_OK")
</pallas_src>

<mosaic_0001>
module attributes {stable_mosaic.version = 11 : i64} {
  func.func @kernel(%arg0: memref<48x512xbf16, #tpu.memory_space<vmem>>, %arg1: memref<8x48xbf16, #tpu.memory_space<vmem>>, %arg2: memref<8x1xf32, #tpu.memory_space<vmem>>, %arg3: memref<8x1xf32, #tpu.memory_space<vmem>>, %arg4: memref<8x128xf32, #tpu.memory_space<vmem>>) attributes {dimension_semantics = [], scalar_prefetch = 0 : i64, scratch_operands = 0 : i64, tpu.core_type = #tpu.core_type<tc>} {
    %c0 = arith.constant 0 : index
    %c0_0 = arith.constant 0 : index
    %0 = vector.load %arg1[%c0, %c0_0] : memref<8x48xbf16, #tpu.memory_space<vmem>>, vector<8x48xbf16>
    %c0_1 = arith.constant 0 : index
    %c0_2 = arith.constant 0 : index
    %1 = vector.load %arg0[%c0_1, %c0_2] : memref<48x512xbf16, #tpu.memory_space<vmem>>, vector<48x512xbf16>
    %cst = arith.constant dense<0.000000e+00> : vector<8x512xf32>
    %2 = tpu.matmul %0, %1, %cst {dimension_numbers = #tpu.dot_dimension_numbers<[1], [0], [0], [1], [0, 0, 1, 1], [], []>} : vector<8x48xbf16>, vector<48x512xbf16>, vector<8x512xf32> -> vector<8x512xf32>
    %cst_3 = arith.constant dense<0.000000e+00> : vector<8xf32>
    %3 = vector.multi_reduction <add>, %2, %cst_3 [1] : vector<8x512xf32> to vector<8xf32>
    %4 = vector.shape_cast %3 : vector<8xf32> to vector<8x1xf32>
    %cst_4 = arith.constant 5.120000e+02 : f32
    %5 = vector.broadcast %cst_4 : f32 to vector<8x1xf32>
    %6 = arith.divf %4, %5 : vector<8x1xf32>
    %7 = vector.broadcast %6 : vector<8x1xf32> to vector<8x512xf32>
    %8 = arith.subf %2, %7 : vector<8x512xf32>
    %9 = arith.mulf %8, %8 : vector<8x512xf32>
    %cst_5 = arith.constant dense<0.000000e+00> : vector<8xf32>
    %10 = vector.multi_reduction <add>, %9, %cst_5 [1] : vector<8x512xf32> to vector<8xf32>
    %11 = vector.shape_cast %10 : vector<8xf32> to vector<8x1xf32>
    %cst_6 = arith.constant 5.120000e+02 : f32
    %12 = vector.broadcast %cst_6 : f32 to vector<8x1xf32>
    %13 = arith.divf %11, %12 : vector<8x1xf32>
    %cst_7 = arith.constant 9.99999974E-6 : f32
    %14 = vector.broadcast %cst_7 : f32 to vector<8x1xf32>
    %15 = arith.addf %13, %14 : vector<8x1xf32>
    %16 = math.rsqrt %15 : vector<8x1xf32>
    %17 = vector.broadcast %16 : vector<8x1xf32> to vector<8x512xf32>
    %18 = arith.mulf %8, %17 : vector<8x512xf32>
    %c0_8 = arith.constant 0 : index
    %c0_9 = arith.constant 0 : index
    %19 = vector.load %arg2[%c0_8, %c0_9] : memref<8x1xf32, #tpu.memory_space<vmem>>, vector<8x1xf32>
    %20 = vector.broadcast %19 : vector<8x1xf32> to vector<8x512xf32>
    %21 = arith.mulf %18, %20 : vector<8x512xf32>
    %c0_10 = arith.constant 0 : index
    %c0_11 = arith.constant 0 : index
    %22 = vector.load %arg3[%c0_10, %c0_11] : memref<8x1xf32, #tpu.memory_space<vmem>>, vector<8x1xf32>
    %23 = vector.broadcast %22 : vector<8x1xf32> to vector<8x512xf32>
    %24 = arith.addf %21, %23 : vector<8x512xf32>
    %cst_12 = arith.constant 0.000000e+00 : f32
    %25 = vector.broadcast %cst_12 : f32 to vector<8x512xf32>
    %26 = arith.maximumf %24, %25 : vector<8x512xf32>
    %27 = vector.extract_strided_slice %26 {offsets = [0, 0], sizes = [8, 128], strides = [1, 1]} : vector<8x512xf32> to vector<8x128xf32>
    %28 = vector.extract_strided_slice %26 {offsets = [0, 128], sizes = [8, 128], strides = [1, 1]} : vector<8x512xf32> to vector<8x128xf32>
    %29 = vector.extract_strided_slice %26 {offsets = [0, 256], sizes = [8, 128], strides = [1, 1]} : vector<8x512xf32> to vector<8x128xf32>
    %30 = vector.extract_strided_slice %26 {offsets = [0, 384], sizes = [8, 128], strides = [1, 1]} : vector<8x512xf32> to vector<8x128xf32>
    %31 = arith.maximumf %27, %28 : vector<8x128xf32>
    %32 = arith.maximumf %31, %29 : vector<8x128xf32>
    %33 = arith.maximumf %32, %30 : vector<8x128xf32>
    %c0_13 = arith.constant 0 : index
    %c0_14 = arith.constant 0 : index
    %34 = vector.load %arg4[%c0_13, %c0_14] : memref<8x128xf32, #tpu.memory_space<vmem>>, vector<8x128xf32>
    tpu.vector_store %arg4[%c0_13, %c0_14], %33 {strides = array<i32>} : memref<8x128xf32, #tpu.memory_space<vmem>>, vector<8x128xf32>,
    return
  }
}

</mosaic_0001>

<bundles_post_ra>
// kernel: tpu_custom_call.1
= control target key start
LH: loop header
LB: loop body
LE: loop exit
PB: predicated region body
PF: predicated region fallthrough
CT: control target
= control target key end

     0   :  { %9 = vsyncpa [#allocation3], 0  ;;  %s414_s0 = inlined_call_operand.hbm [shape: bf16[48,512], index: 0, kind: input, shape index: {}]   ;;  %s415_s1 = inlined_call_operand.vmem [shape: bf16[8,48], index: 1, kind: input, shape index: {}]   ;;  %s416_s2 = inlined_call_operand.vmem [shape: f32[8,1], index: 2, kind: input, shape index: {}]   ;;  %s417_s3 = inlined_call_operand.vmem [shape: f32[8,1], index: 3, kind: input, shape index: {}]   ;;  %s418_s4 = inlined_call_operand.hbm [shape: f32[8,128], index: 4, kind: output, shape index: {}]  }
   0x1   :  { %10 = vsyncpa [#allocation4], 0  ;;  %s351_s15 = smov [#allocation2]   ;;  %s303_s19 = scalar_lea.hbm %s414_s0, 1536 }
   0x2   :  { %s16_s16 = sshll.u32 %s351_s15, 4  ;;  %p304_p0 = scmp.ne.s32.totalorder %s414_s0, %s303_s19  ;;  %s17_s16 = int_to_ptr.vmem [resolvable:$true] %s16_s16 }
   0x3   :  { %p307_p1 = scmp.lt.u32.totalorder %s303_s19, %s414_s0 }
   0x5   :  { %p309_p2 = pnand %p307_p1, %p304_p0 }
   0x7   :  { %312 = shalt.err (!%p309_p2)
}
   0x8   :  { %s313_s24 = scalar_lea.vmem %s17_s16, 1536  ;;  %p318_p4 = scmp.lt.s32.totalorder %s17_s16, %s17_s16 }
   0x9   :  { %p314_p3 = scmp.ne.s32.totalorder %s17_s16, %s313_s24  ;;  %p319_p5 = scmp.lt.s32.totalorder %s313_s24, %s313_s24 }
   0xb   :  { %p320_p6 = por %p319_p5, %p318_p4 }
   0xd   :  { %p321_p7 = pnand %p320_p6, %p314_p3 }
   0xf   :  { %324 = shalt.err (!%p321_p7)
}
  0x10   :  { %s352_s25 = smov 256   ;;  %s353_s26 = smov 16  }
  0x11   :  { %22 = dma.hbm_to_vmem [thread:$0]  %s414_s0, 1536, %s17_s16, [#allocation3], %s352_s25, %s352_s25, %s353_s26  }
  0x12   :  { %347 = dma.done.wait [#allocation3], 1536  }
  0x13   :  { %348 = vsyncadd [#allocation3], 4294965760  ;;  %v354_v0 = vmov 0   ;;  %v283_v1 = vld [vmem:[#allocation2 + $0x4] ss:$16 sps:$4 sm:$0xff]   ;;  %vm106_vm0 = vcmask 392192  }
  0x14   :  { %142 = vmatprep.mubr.bf16.mxu0 %v354_v0  ;;  %183 = vmatprep.mubr.bf16.mxu1 %v354_v0  ;;  %v285_v2 = vld [vmem:[#allocation2 + $0xc] ss:$16 sps:$4 sm:$0xff]   ;;  %v287_v3 = vld [vmem:[#allocation2] ss:$16 sps:$4 sm:$0xff]   ;;  %v288_v4 = vld [vmem:[#allocation2 + $0x8] ss:$16 sps:$4 sm:$0xff]  }
  0x15   :  { %281 = vset.pattern.permute.xlu1 %v354_v0  ;;  %282 = vset.pattern.permute.xlu0 %v354_v0  ;;  %v289_v5 = vld [vmem:[#allocation2 + $0x24] ss:$16 sps:$4 sm:$0xff]   ;;  %v291_v6 = vld [vmem:[#allocation2 + $0x2c] ss:$16 sps:$4 sm:$0xff]   ;;  %v293_v7 = vld [vmem:[#allocation2 + $0x20] ss:$16 sps:$4 sm:$0xff]  }
  0x16   :  { %110 = vmatprep.subr.bf16.mxu0 %v283_v1  ;;  %151 = vmatprep.subr.bf16.mxu1 %v285_v2  ;;  %v294_v8 = vld [vmem:[#allocation2 + $0x28] ss:$16 sps:$4 sm:$0xff]   ;;  %v295_v9 = vld [vmem:[#allocation2 + $0x44] ss:$16 sps:$4 sm:$0xff]   ;;  %v297_v10 = vld [vmem:[#allocation2 + $0x4c] ss:$16 sps:$4 sm:$0xff]  }
  0x17   :  { %111 = vmatpush1.bf16.msra.mxu0 %v287_v3  ;;  %152 = vmatpush1.bf16.msra.mxu1 %v288_v4  ;;  %v299_v11 = vld [vmem:[#allocation2 + $0x40] ss:$16 sps:$4 sm:$0xff]   ;;  %v300_v12 = vld [vmem:[#allocation2 + $0x48] ss:$16 sps:$4 sm:$0xff]  }
  0x18   :  { %112 = vmatprep.subr.bf16.mxu0 %v289_v5  ;;  %153 = vmatprep.subr.bf16.mxu1 %v291_v6  ;;  %v33_v13 = vld [vmem:[%s415_s1] sm:$0xf] }
  0x19   :  { %v219_v25 = vld [vmem:[%s416_s2] sm:$0xff]  ;;  %s355_s2 = smov [#allocation5]  }
  0x1a   :  { %222 = vperm.xlu1 %281, %v219_v25   ;;  %v229_v26 = vld [vmem:[%s417_s3] sm:$0xff]  ;;  %s253_s3 = sshll.u32 %s355_s2, 4  ;;  %s254_s3 = int_to_ptr.vmem [resolvable:$true] %s253_s3 }
  0x1b   :  { %113 = vmatpush1.bf16.msra.mxu0 %v293_v7  ;;  %154 = vmatpush1.bf16.msra.mxu1 %v294_v8  ;;  %s325_s7 = scalar_lea.vmem %s254_s3, 128  ;;  %p330_p9 = scmp.lt.s32.totalorder %s254_s3, %s254_s3 }
  0x1c   :  { %114 = vmatprep.subr.bf16.mxu0 %v295_v9  ;;  %155 = vmatprep.subr.bf16.mxu1 %v297_v10  ;;  %p326_p8 = scmp.ne.s32.totalorder %s254_s3, %s325_s7  ;;  %p331_p10 = scmp.lt.s32.totalorder %s325_s7, %s325_s7 }
  0x1e   :  { %232 = vperm.xlu1 %281, %v229_v26   ;;  %p332_p11 = por %p331_p10, %p330_p9 }
  0x1f   :  { %115 = vmatpush1.bf16.msra.mxu0 %v299_v11  ;;  %156 = vmatpush1.bf16.msra.mxu1 %v300_v12 }
  0x20   :  { %p333_p12 = pnand %p332_p11, %p326_p8 }
  0x22   :  { %274 = vmatmul.mubr.msk.bf16.vlgmr.msra.gmra.mrb[0].mxu0 %vm106_vm0, %v33_v13  ;;  %275 = vmatmul.mubr.msk.bf16.vlgmr.msra.gmra.mrb[0].mxu1 %vm106_vm0, %v33_v13 }
  0x99   :  { %v223_v43 = vpop.permute.xlu1 %222 }
  0x9d   :  { %v233_v53 = vpop.permute.xlu1 %232 }
  0xf5   :  { %v144_v14 = vpop.f32.mrb[0].mxu0  ;;  %v185_v15 = vpop.f32.mrb[0].mxu1 }
  0xf6   :  { %v146_v16 = vpop.f32.mrb[1].mxu0  ;;  %v187_v17 = vpop.f32.mrb[1].mxu1 }
  0xf7   :  { %v192_v18 = vadd.f32 %v146_v16, %v144_v14  ;;  %v148_v19 = vpop.f32.mrb[2].mxu0  ;;  %v189_v20 = vpop.f32.mrb[2].mxu1 }
  0xf8   :  { %v149_v21 = vpop.f32.mrb[3].mxu0  ;;  %v190_v22 = vpop.f32.mrb[3].mxu1 }
  0xf9   :  { %v193_v23 = vadd.f32 %v192_v18, %v185_v15 }
  0xfb   :  { %v194_v24 = vadd.f32 %v193_v23, %v187_v17 }
  0xfd   :  { %195 = vadd.xlane.f32.xlu0 %v194_v24 }
 0x18a   :  { %v196_v27 = vpop.xlane.xlu0 %195 }
 0x18b   :  { %v198_v28 = vmul.f32 0.001953125, %v196_v27 }
 0x18d   :  { %v199_v29 = vsub.f32 %v144_v14, %v198_v28  ;;  %v200_v30 = vsub.f32 %v146_v16, %v198_v28  ;;  %v201_v31 = vsub.f32 %v185_v15, %v198_v28  ;;  %v202_v32 = vsub.f32 %v187_v17, %v198_v28 }
 0x18f   :  { %v203_v33 = vmul.f32 %v199_v29, %v199_v29  ;;  %v204_v34 = vmul.f32 %v200_v30, %v200_v30  ;;  %v205_v35 = vmul.f32 %v201_v31, %v201_v31  ;;  %v206_v37 = vmul.f32 %v202_v32, %v202_v32 }
 0x191   :  { %v207_v36 = vadd.f32 %v204_v34, %v203_v33 }
 0x193   :  { %v208_v38 = vadd.f32 %v207_v36, %v205_v35 }
 0x195   :  { %v209_v39 = vadd.f32 %v208_v38, %v206_v37 }
 0x197   :  { %210 = vadd.xlane.f32.xlu0 %v209_v39 }
 0x224   :  { %v211_v40 = vpop.xlane.xlu0 %210 }
 0x225   :  { %v212_v41 = vmul.f32 0.001953125, %v211_v40 }
 0x227   :  { %v213_v42 = vadd.f32 1e-05, %v212_v41 }
 0x229   :  { %301 = vrsqrt.f32 %v213_v42 }
 0x233   :  { %v302_v44 = vpop.eup %301 }
 0x234   :  { %v215_v45 = vmul.f32 %v302_v44, %v199_v29  ;;  %v216_v46 = vmul.f32 %v302_v44, %v200_v30  ;;  %v217_v47 = vmul.f32 %v302_v44, %v201_v31  ;;  %v218_v48 = vmul.f32 %v302_v44, %v202_v32 }
 0x236   :  { %v225_v49 = vmul.f32 %v223_v43, %v215_v45  ;;  %v226_v50 = vmul.f32 %v223_v43, %v216_v46  ;;  %v227_v51 = vmul.f32 %v223_v43, %v217_v47  ;;  %v228_v52 = vmul.f32 %v223_v43, %v218_v48 }
 0x238   :  { %v235_v54 = vadd.f32 %v233_v53, %v225_v49  ;;  %v236_v55 = vadd.f32 %v233_v53, %v226_v50  ;;  %v237_v56 = vadd.f32 %v233_v53, %v227_v51  ;;  %v238_v57 = vadd.f32 %v233_v53, %v228_v52 }
 0x23a   :  { %v239_v58 = vmax.f32 %v235_v54, 0.0  ;;  %v240_v59 = vmax.f32 %v236_v55, 0.0  ;;  %v241_v60 = vmax.f32 %v237_v56, 0.0  ;;  %v242_v62 = vmax.f32 %v238_v57, 0.0 }
 0x23c   :  { %v243_v61 = vmax.f32 %v239_v58, %v240_v59 }
 0x23e   :  { %v244_v63 = vmax.f32 %v243_v61, %v241_v60 }
 0x240   :  { %v245_v0 = vmax.f32 %v244_v63, %v242_v62 }
 0x242   :  { %246 = vst [vmem:[#allocation5] sm:$0xff] %v245_v0 }
 0x243   :  { %336 = shalt.err (!%p333_p12)
}
 0x244   :  { %s337_s10 = scalar_lea.hbm %s418_s4, 128 }
 0x245   :  { %p338_p13 = scmp.ne.s32.totalorder %s418_s4, %s337_s10  ;;  %p341_p0 = scmp.lt.u32.totalorder %s337_s10, %s418_s4 }
 0x247   :  { %p343_p1 = pnand %p341_p0, %p338_p13 }
 0x249   :  { %346 = shalt.err (!%p343_p1)
}
 0x24a   :  { %256 = dma.vmem_to_hbm [thread:$0]  %s254_s3, 128, %s418_s4, [#allocation4]  }
 0x24b   :  { %349 = dma.done.wait [#allocation4], 128  }
 0x24c   :  { %350 = vsyncadd [#allocation4], 4294967168 }
 0x24d   :  { %260 = vsyncpa [#allocation3], 1 }
 0x24e   :  { %261 = vsyncpa [#allocation4], 1 }

</bundles_post_ra>
